<compile_context>
chip_gen: v7x
topology: tpu7x:2x2x1
jax: 0.10.0
libtpu: 0.0.40
codegen_flags: <defaults>
</compile_context>

<pallas_src>
import math

import jax
import jax.numpy as jnp
from jax.experimental import pallas as pl
from jax.experimental.pallas import tpu as pltpu


_SMALL_BYTES = 1 << 20          # below this, a fused XLA clamp wins outright
_LANE_CANDIDATES = (8192, 4096, 2048, 1024, 512, 256, 128)


# ----------------------------- Pallas kernel --------------------------------
def _clip_kernel(boxes_ref, upper_ref, out_ref):
    """out = min(max(boxes, 0), upper);  upper is (1, LANE), broadcast on rows."""
    b = boxes_ref[...]
    zero = jnp.zeros((), dtype=b.dtype)
    out_ref[...] = jnp.minimum(jnp.maximum(b, zero), upper_ref[...])


# ----------------------------- helpers ---------------------------------------
def _bound_value(val, dtype):
    """Largest value representable in `dtype` that is <= val (val >= 0)."""
    dtype = jnp.dtype(dtype)
    cand = jnp.asarray(val, dtype)
    if (not jnp.issubdtype(dtype, jnp.floating)
            or dtype in (jnp.dtype(jnp.float32), jnp.dtype(jnp.float64))):
        return cand                      # exact for f32/f64/ints at image sizes
    # bf16 / f16: if the cast rounded UP, step down one ulp via the bit pattern.
    uint = jnp.uint16 if dtype.itemsize == 2 else jnp.uint32
    bits = jax.lax.bitcast_convert_type(cand, uint)
    prev = jax.lax.bitcast_convert_type(bits - jnp.asarray(1, uint), dtype)
    return jnp.where(cand.astype(jnp.float32) > jnp.float32(val), prev, cand)


def _bound_vector(lane, max_x, max_y, dtype):
    """(1, LANE) per-lane upper bound: even lanes -> x bound, odd lanes -> y."""
    bx = _bound_value(max_x, dtype)
    by = _bound_value(max_y, dtype)
    l = jnp.arange(lane, dtype=jnp.int32)
    return jnp.where((l & 1) == 0, bx, by).astype(dtype).reshape(1, lane)


def _pick_lane(total):
    """Largest even multiple-of-128 lane width that exactly divides `total`."""
    for cand in _LANE_CANDIDATES:
        if total % cand == 0:
            return cand
    return None


def _clip_jnp(boxes, max_x, max_y):
    """Fused XLA fast path for small / non-factorable inputs."""
    dtype = boxes.dtype
    bx = _bound_value(max_x, dtype)
    by = _bound_value(max_y, dtype)
    upper = jnp.where(jnp.arange(4) % 2 == 0, bx, by).astype(dtype)   # (4,)
    return jnp.minimum(jnp.maximum(boxes, jnp.zeros((), dtype)), upper)


# ----------------------------- Pallas path -----------------------------------
def _clip_boxes_pallas(flat2d, max_x, max_y, *, donate=False,
                       target_block_bytes=1 << 20):
    """flat2d: (M, LANE) view of the flattened xyxy boxes (LANE even, %128==0)."""
    M, lane = flat2d.shape
    assert lane % 128 == 0 and lane % 2 == 0, "lane width must be an even x128"

    itemsize = jnp.dtype(flat2d.dtype).itemsize
    row_target = max(8, (target_block_bytes // (lane * itemsize)) // 8 * 8)
    if M <= 8:
        row_tile = M                              # single full-extent block
    else:
        # >= 2 grid steps (megacore) while staying near the ~1 MiB block target
        half = max(8, (pl.cdiv(M, 2) // 8) * 8)
        row_tile = min(row_target, half)
    grid = (pl.cdiv(M, row_tile),)                # partial edge block is masked

    upper = _bound_vector(lane, max_x, max_y, flat2d.dtype)

    return pl.pallas_call(
        _clip_kernel,
        out_shape=jax.ShapeDtypeStruct((M, lane), flat2d.dtype),
        grid=grid,
        in_specs=[
            pl.BlockSpec((row_tile, lane), lambda i: (i, 0)),
            pl.BlockSpec((1, lane), lambda i: (0, 0)),     # resident bound vec
        ],
        out_specs=pl.BlockSpec((row_tile, lane), lambda i: (i, 0)),
        compiler_params=pltpu.CompilerParams(
            dimension_semantics=("parallel",)),
        input_output_aliases={0: 0} if donate else {},
    )(flat2d, upper)


# ----------------------------- wrapper ---------------------------------------
def clip_boxes(boxes, img_h, img_w, *, use_pallas=None, donate=False):
    """Clamp xyxy boxes [..., 4] to x in [0, img_w-1], y in [0, img_h-1]."""
    assert boxes.shape[-1] == 4, "boxes must have last dim 4 (x1,y1,x2,y2)"
    max_x = float(img_w - 1)
    max_y = float(img_h - 1)

    total = math.prod(boxes.shape)
    small = total * jnp.dtype(boxes.dtype).itemsize < _SMALL_BYTES
    lane = _pick_lane(total)

    if use_pallas is None:
        use_pallas = (not small) and (lane is not None)
    if use_pallas and lane is None:
        # TODO(synk): totals with no even >=128 factor fall back to the fused
        # XLA clamp instead of a padded Pallas pass (pad+slice would double
        # HBM traffic for this mem-bound op).
        use_pallas = False

    if not use_pallas:
        return _clip_jnp(boxes, max_x, max_y)

    flat2d = boxes.reshape(total // lane, lane)          # free contiguous view
    out = _clip_boxes_pallas(flat2d, max_x, max_y, donate=donate)
    return out.reshape(boxes.shape)


class ClipBoxes:
    """JAX/Pallas equivalent of the PyTorch ClipBoxes module.

    PyTorch mutates batch_boxes in place; here new (clipped) arrays are
    returned, which is the functional equivalent of its return value.
    """

    def __call__(self, batch_imgs, batch_boxes):
        h, w = batch_imgs.shape[2], batch_imgs.shape[3]
        if isinstance(batch_boxes, (list, tuple)):
            shapes = {tuple(b.shape) for b in batch_boxes}
            dtypes = {jnp.dtype(b.dtype) for b in batch_boxes}
            if len(batch_boxes) > 1 and len(shapes) == 1 and len(dtypes) == 1:
                # one launch for the whole batch instead of one per image
                out = clip_boxes(jnp.stack(batch_boxes), h, w)
                return [out[i] for i in range(out.shape[0])]
            return [clip_boxes(b, h, w) for b in batch_boxes]
        # [B, N, 4] tensor: clamping everything at once == the per-image loop.
        return clip_boxes(batch_boxes, h, w)


# ----------------------------- demo -----------------------------------------
if __name__ == "__main__":
    key = jax.random.PRNGKey(0)
    B, C, H, W = 2, 3, 64, 96                  # H != W so x/y bounds differ
    k_img, k_box1, k_box2 = jax.random.split(key, 3)
    batch_imgs = jax.random.normal(k_img, (B, C, H, W), jnp.float32)

    def ref_clip(bxs):
        upper = jnp.where(jnp.arange(4) % 2 == 0, float(W - 1), float(H - 1))
        return jnp.minimum(jnp.maximum(bxs, 0.0), upper.astype(bxs.dtype))

    # (1) module-level call, auto path (tiny input -> fused XLA clamp)
    N_small = 100
    boxes_small = jax.random.uniform(
        k_box1, (B, N_small, 4), jnp.float32, minval=-25.0, maxval=W + 25.0)
    out_small = ClipBoxes()(batch_imgs, boxes_small)
    out_small = jax.block_until_ready(out_small)
    assert out_small.shape == boxes_small.shape
    assert jnp.allclose(out_small, ref_clip(boxes_small))

    # (2) explicit Pallas path: (75, 512) view -> 3 grid steps, masked edge
    N_pallas = 4800
    boxes_pallas = jax.random.uniform(
        k_box2, (B, N_pallas, 4), jnp.float32, minval=-25.0, maxval=W + 25.0)
    out_pallas = clip_boxes(boxes_pallas, H, W, use_pallas=True)
    out_pallas = jax.block_until_ready(out_pallas)
    assert out_pallas.shape == boxes_pallas.shape
    assert jnp.allclose(out_pallas, ref_clip(boxes_pallas)), \
        "Pallas ClipBoxes mismatch vs reference"
    assert float(jnp.min(out_pallas)) >= 0.0
    assert float(jnp.max(out_pallas[..., 0::2])) <= W - 1
    assert float(jnp.max(out_pallas[..., 1::2])) <= H - 1

    # bound-rounding sanity: 1279 is not representable in bf16 (rounds to 1280)
    assert float(_bound_value(1279.0, jnp.bfloat16)) <= 1279.0

    print("KERNEL_OK")
</pallas_src>

<mosaic_0001>
module attributes {stable_mosaic.version = 11 : i64} {
  func.func @_clip_kernel(%arg0: i32, %arg1: memref<32x512xf32, #tpu.memory_space<vmem>>, %arg2: memref<1x512xf32, #tpu.memory_space<vmem>>, %arg3: memref<32x512xf32, #tpu.memory_space<vmem>>) attributes {dimension_semantics = [#tpu.dimension_semantics<parallel>], iteration_bounds = array<i64: 3>, scalar_prefetch = 0 : i64, scratch_operands = 0 : i64, tpu.core_type = #tpu.core_type<tc>, window_params = [{transform_indices = @transform_0, window_bounds = array<i64: 32, 512>}, {pipeline_mode = #tpu.pipeline_mode<synchronous>, transform_indices = @transform_1, window_bounds = array<i64: 1, 512>}, {transform_indices = @transform_2, window_bounds = array<i64: 32, 512>}]} {
    %c0 = arith.constant 0 : index
    %c0_0 = arith.constant 0 : index
    %0 = vector.load %arg1[%c0, %c0_0] : memref<32x512xf32, #tpu.memory_space<vmem>>, vector<32x512xf32>
    %cst = arith.constant 0.000000e+00 : f32
    %1 = vector.broadcast %cst : f32 to vector<32x512xf32>
    %2 = arith.maximumf %0, %1 : vector<32x512xf32>
    %c0_1 = arith.constant 0 : index
    %c0_2 = arith.constant 0 : index
    %3 = vector.load %arg2[%c0_1, %c0_2] : memref<1x512xf32, #tpu.memory_space<vmem>>, vector<1x512xf32>
    %4 = vector.broadcast %3 : vector<1x512xf32> to vector<32x512xf32>
    %5 = arith.minimumf %2, %4 : vector<32x512xf32>
    %c0_3 = arith.constant 0 : index
    %c0_4 = arith.constant 0 : index
    %6 = vector.load %arg3[%c0_3, %c0_4] : memref<32x512xf32, #tpu.memory_space<vmem>>, vector<32x512xf32>
    tpu.vector_store %arg3[%c0_3, %c0_4], %5 {strides = array<i32>} : memref<32x512xf32, #tpu.memory_space<vmem>>, vector<32x512xf32>,
    return
  }
  func.func @transform_0(%arg0: i32) -> (i32, i32) {
    %c0_i32 = arith.constant 0 : i32
    %c0_i32_0 = arith.constant 0 : i32
    return %arg0, %c0_i32 : i32, i32
  }
  func.func @transform_1(%arg0: i32) -> (i32, i32) {
    %c0_i32 = arith.constant 0 : i32
    %c0_i32_0 = arith.constant 0 : i32
    %c0_i32_1 = arith.constant 0 : i32
    return %c0_i32, %c0_i32_0 : i32, i32
  }
  func.func @transform_2(%arg0: i32) -> (i32, i32) {
    %c0_i32 = arith.constant 0 : i32
    %c0_i32_0 = arith.constant 0 : i32
    return %arg0, %c0_i32 : i32, i32
  }
}

</mosaic_0001>

<bundles_post_ra>
// kernel: tpu_custom_call.1
= control target key start
LH: loop header
LB: loop body
LE: loop exit
PB: predicated region body
PF: predicated region fallthrough
CT: control target
= control target key end

     0   :  { %7 = vsyncpa [#allocation3], 0  ;;  %s874_s0 = inlined_call_operand.hbm [shape: f32[75,512], index: 0, kind: input, shape index: {}]   ;;  %s875_s1 = inlined_call_operand.hbm [shape: f32[1,512], index: 1, kind: input, shape index: {}]   ;;  %s876_s2 = inlined_call_operand.hbm [shape: f32[75,512], index: 2, kind: output, shape index: {}]  }
   0x1   :  { %9 = vsyncpa [#allocation3 + $0x1], 0 }
   0x2   :  { %10 = vsyncpa [#allocation6], 0 }
   0x3   :  { %11 = vsyncpa [#allocation4], 0 }
   0x4   :  { %13 = vsyncpa [#allocation4 + $0x1], 0  ;;  %s624_s9 = smov 0   ;;  %s626_s10 = smov 0  }
   0x5   :  { %s628_s11 = smov 0   ;;  %s630_s12 = smov 0  }
   0x6 LB: > { %s645_s13 = sadd.s32 4294967295, %s600_s12   ;;  %s386_s14 = sadd.s32 4294967294, %s600_s12   ;;  %s600_s12 = sphi %s630_s12, %s896_s12   ;;  %s596_s11 = sphi %s628_s11, %s895_s11   ;;  %s592_s10 = sphi %s626_s10, %s894_s10   ;;  %s588_s9 = sphi %s624_s9, %s893_s9  }
   0x7   : > { %s649_s15 = sadd.s32 1, %s600_s12   ;;  %s26_s16 = sadd.s32 1, %s596_s11 }
   0x8   : > { %s23_s17 = ssub.s32 %s600_s12, %s649_s15  ;;  %p33_p0 = scmp.ne.s32.totalorder %s596_s11, %s592_s10 }
   0x9   : > { %p24_p1 = scmp.eq.s32.totalorder %s23_s17, 0  ;;  %p34_p2 = scmp.eq.s32.totalorder %s600_s12, 0 }
   0xa   : > { %p39_p3 = scmp.ne.s32.totalorder %s592_s10, %s588_s9  ;;  %p877_p4 = scmp.eq.s32.totalorder %s645_s13, 0 }
   0xb   : > { %s661_s18 = scalar_select %p24_p1, %s596_s11, %s26_s16  }
   0xc   : > { %p663_p5 = por %p34_p2, %p33_p0  ;;  %p669_p6 = por %p877_p4, %p39_p3 }
   0xd   : > { %p84_p7 = scmp.eq.s32.totalorder %s645_s13, 2  ;;  %p90_p8 = scmp.eq.s32.totalorder %s386_s14, 2 }
   0xe   : > { %s880_s19 = scalar_select %p663_p5, 1, 0 }
   0xf   : > { %s881_s20 = scalar_select %p669_p6, 1, 0 }
  0x10   : > { %p387_p9 = scmp.ge.s32.totalorder %s600_s12, 1  ;;  %p97_p10 = scmp.lt.s32.totalorder %s600_s12, 4 }
  0x11   : > { %p676_p11 = por %p84_p7, %p33_p0  ;;  %p680_p12 = por %p90_p8, %p39_p3 }
  0x12   : > { %p684_p13 = pnand %p387_p9, %p97_p10  ;;  %s602_s24 = smov [#allocation5]  }
  0x13   : > { %s882_s21 = scalar_select %p676_p11, 1, 0 }
  0x14   : > { %s883_s22 = scalar_select %p680_p12, 1, 0 }
  0x15   : > { %s884_s23 = scalar_select %p684_p13, 1, 0 }
  0x16   : > { %p426_p1 = pneg %p684_p13  ;;  %s110_s25 = sshll.u32 %s602_s24, 4  ;;  %s111_s25 = int_to_ptr.vmem [resolvable:$true] %s110_s25 }
  0x17   : > { %s474_s29 = scalar_lea.hbm %s875_s1, 64 }
  0x18   : > { %p692_p2 = pnand %p426_p1, %p877_p4  ;;  %p475_p0 = scmp.ne.s32.totalorder %s875_s1, %s474_s29 }
  0x19   : > { %p481_p9 = scmp.lt.u32.totalorder %s474_s29, %s875_s1 }
  0x1a   : > { %p476_p3 = pneg %p692_p2 }
  0x1c   : > { %p477_p7 = pnand %p476_p3, %p475_p0 }
  0x1e   : > { %p478_p8 = pneg %p477_p7 }
  0x20   : > { %p483_p10 = pnand %p481_p9, %p478_p8 }
  0x22   : > { %486 = shalt.err (!%p483_p10)
}
  0x23   : > { %s487_s6 = scalar_lea.vmem %s111_s25, 64  ;;  %p495_p11 = scmp.lt.s32.totalorder %s111_s25, %s111_s25 }
  0x24   : > { %p488_p1 = scmp.ne.s32.totalorder %s111_s25, %s487_s6  ;;  %p496_p6 = scmp.lt.s32.totalorder %s487_s6, %s487_s6 }
  0x26   : > { %p490_p4 = pnand %p488_p1, %p476_p3  ;;  %p497_p13 = por %p496_p6, %p495_p11 }
  0x28   : > { %p491_p12 = pneg %p490_p4 }
  0x2a   : > { %p498_p5 = pnand %p497_p13, %p491_p12 }
  0x2c   : > { %501 = shalt.err (!%p498_p5)
}
  0x2d   : > { %429 = dma.hbm_to_vmem [thread:$0]  (!%p692_p2), %s875_s1, 64, %s111_s25, [#allocation6]  }
  0x2e   : > { %p389_p0 = scmp.ge.s32.totalorder %s600_s12, 3 }
  0x2f   : > { %p886_p7 = scmp.ne.s32.totalorder (!%p389_p0), %s880_s19, 0 }
  0x30   : > { %117 = sbr.rel (%p389_p0) target bundleno = 90 (0x5a), region = 20 }
  0x37   : > { %120 = sbr.rel (!%p886_p7) target bundleno = 90 (0x5a), region = 24  ;;  %s121_s14 = sand.u32 (%p886_p7), 1, %s596_s11  }
  0x38   : > { %s391_s16 = sshll.u32 (%p886_p7), %s600_s12, 2  ;;  %s390_s17 = sshll.u32 (%p886_p7), %s121_s14, 7 }
  0x39   : > { %s127_s24 = ssub.s32 (%p886_p7), 10, %s391_s16  ;;  %s720_s28 = scalar_lea.sflag (%p886_p7), [#allocation3], %s121_s14 }
  0x3a   : > { %p128_p4 = scmp.lt.s32.totalorder (%p886_p7), %s127_s24, 4  ;;  %s125_s25 = scalar_lea.vmem (%p886_p7), [#allocation2], %s390_s17 }
  0x3e   : > { %s898_s24 = smov (!%p128_p4, %s127_s24), 4 }
  0x3f   : > { %s717_s27 = sshll.u32 %s898_s24, 9 }
  0x40   : > { %s133_s26 = ssub.s32 2048, %s717_s27 }
  0x41   : > { %134 = vsyncadd %s720_s28, %s133_s26  ;;  %p394_p5 = scmp.ne.s32.totalorder %s717_s27, 0  ;;  %s416_s19 = sshll.u32 %s600_s12, 11 }
  0x42   : > { %s728_s3 = scalar_lea.hbm %s874_s0, %s416_s19  ;;  %s140_s4 = sshll.u32 %s125_s25, 4  ;;  %s730_s4 = int_to_ptr.vmem [resolvable:$true] %s140_s4 }
  0x43   : > { %s502_s5 = scalar_lea.hbm %s728_s3, %s717_s27  ;;  %s506_s8 = scalar_lea.hbm %s874_s0, 5120 }
  0x44   : > { %p503_p6 = scmp.ne.s32.totalorder %s728_s3, %s502_s5  ;;  %p507_p13 = scmp.lt.u32.totalorder %s728_s3, %s874_s0 }
  0x45   : > { %p508_p2 = scmp.lt.u32.totalorder %s506_s8, %s502_s5  ;;  %p510_p8 = scmp.lt.u32.totalorder %s502_s5, %s728_s3 }
  0x46   : > { %p504_p11 = pnand %p503_p6, %p394_p5 }
  0x47   : > { %p509_p3 = por %p508_p2, %p507_p13 }
  0x48   : > { %p505_p12 = pneg %p504_p11 }
  0x49   : > { %p511_p9 = por %p510_p8, %p509_p3 }
  0x4b   : > { %p512_p10 = pnand %p511_p9, %p505_p12 }
  0x4d   : > { %515 = shalt.err (!%p512_p10)
}
  0x4e   : > { %s516_s17 = scalar_lea.vmem %s730_s4, %s717_s27  ;;  %s603_s24 = smov [#allocation2]  }
  0x4f   : > { %p517_p1 = scmp.ne.s32.totalorder %s730_s4, %s516_s17  ;;  %s520_s26 = sshll.u32 %s603_s24, 4  ;;  %s521_s26 = int_to_ptr.vmem [resolvable:$false] %s520_s26 }
  0x50   : > { %s522_s25 = scalar_lea.vmem %s521_s26, 4096  ;;  %p523_p4 = scmp.lt.s32.totalorder %s730_s4, %s521_s26 }
  0x51   : > { %p518_p0 = pnand %p517_p1, %p394_p5  ;;  %p524_p6 = scmp.lt.s32.totalorder %s522_s25, %s516_s17 }
  0x53   : > { %p519_p7 = pneg %p518_p0  ;;  %p525_p11 = por %p524_p6, %p523_p4 }
  0x55   : > { %p526_p13 = pnand %p525_p11, %p519_p7 }
  0x57   : > { %529 = shalt.err (!%p526_p13)
}
  0x58   : > { %s604_s19 = smov 512   ;;  %s605_s29 = smov 32  }
  0x59   : > { %146 = dma.hbm_to_vmem [thread:$0]  (%p394_p5), %s728_s3, %s717_s27, %s730_s4, %s720_s28, %s604_s19, %s604_s19, %s605_s29  }
  0x5a PF: > { %p887_p12 = scmp.ne.s32.totalorder %s884_s23, 0 }
  0x5b   : > { %s760_s30 = sand.u32 (!%p887_p12), 1, %s592_s10   ;;  %p888_p2 = scmp.ne.s32.totalorder (!%p887_p12), %s881_s20, 0 }
  0x5c   : > { %152 = sbr.rel (%p887_p12) target bundleno = 149 (0x95), region = 28  ;;  %s400_s5 = sshll.u32 (!%p887_p12), %s760_s30, 7 }
  0x5d   : > { %s155_s6 = scalar_lea.sflag (!%p887_p12), [#allocation3], %s760_s30  ;;  %s766_s7 = scalar_lea.vmem (!%p887_p12), [#allocation2], %s400_s5 }
  0x63   : > { %575 = dma.done.wait (%p888_p2), %s155_s6, 2048  }
  0x64   : > { %577 = vsyncadd (%p888_p2), %s155_s6, 4294965248  ;;  %p889_p5 = scmp.eq.s32.totalorder %s645_s13, 0 }
  0x66   : > { %579 = dma.done.wait (%p889_p5), [#allocation6], 64   ;;  %p890_p3 = pmov %p889_p5 }
  0x67   : > { %v229_v0 = vlaneseq  ;;  %v195_v6 = vld [vmem:[%s766_s7] sm:$0xff]  ;;  %v196_v8 = vld [vmem:[%s766_s7 + $0x8] sm:$0xff]  ;;  %v197_v13 = vld [vmem:[%s766_s7 + $0x10] sm:$0xff]  ;;  %s792_s20 = scalar_lea.vmem [#allocation7], %s400_s5  ;;  %s282_s23 = scalar_lea.sflag [#allocation4], %s760_s30 }
  0x68   : > { %581 = vsyncadd (%p890_p3), [#allocation6], 4294967232  ;;  %v227_v7 = vld [vmem:[#allocation5] sm:$0xf]  ;;  %v211_v9 = vmax.f32 %v195_v6, 0.0  ;;  %v212_v11 = vmax.f32 %v196_v8, 0.0 }
  0x69   : > { %v230_v1 = vshrl.u32 %v229_v0, 7  ;;  %v198_v14 = vld [vmem:[%s766_s7 + $0x18] sm:$0xff]  ;;  %v199_v15 = vld [vmem:[%s766_s7 + $0x20] sm:$0xff]  ;;  %v213_v16 = vmax.f32 %v197_v13, 0.0  ;;  %v200_v20 = vld [vmem:[%s766_s7 + $0x28] sm:$0xff]  ;;  %p891_p8 = scmp.ne.s32.totalorder %s882_s21, 0 }
  0x6a   : > { %v214_v18 = vmax.f32 %v198_v14, 0.0  ;;  %v201_v21 = vld [vmem:[%s766_s7 + $0x30] sm:$0xff]  ;;  %v202_v22 = vld [vmem:[%s766_s7 + $0x38] sm:$0xff]  ;;  %v215_v25 = vmax.f32 %v199_v15, 0.0  ;;  %v216_v26 = vmax.f32 %v200_v20, 0.0  ;;  %v203_v27 = vld [vmem:[%s766_s7 + $0x40] sm:$0xff] }
  0x6b   : > { %v231_v2 = vsub.s32 0, %v230_v1  ;;  %v235_v3 = vsub.s32 1, %v230_v1  ;;  %v239_v4 = vsub.s32 2, %v230_v1  ;;  %v243_v5 = vsub.s32 3, %v230_v1  ;;  %v204_v28 = vld [vmem:[%s766_s7 + $0x48] sm:$0xff]  ;;  %v205_v29 = vld [vmem:[%s766_s7 + $0x50] sm:$0xff] }
  0x6c   : > { %v217_v32 = vmax.f32 %v201_v21, 0.0  ;;  %v218_v33 = vmax.f32 %v202_v22, 0.0  ;;  %v206_v34 = vld [vmem:[%s766_s7 + $0x58] sm:$0xff]  ;;  %v207_v35 = vld [vmem:[%s766_s7 + $0x60] sm:$0xff]  ;;  %v208_v36 = vld [vmem:[%s766_s7 + $0x68] sm:$0xff]  ;;  %v219_v39 = vmax.f32 %v203_v27, 0.0 }
  0x6d   : > { %v232_v10 = vrot.slane %v227_v7, %v231_v2  ;;  %v236_v12 = vrot.slane %v227_v7, %v235_v3  ;;  %v240_v17 = vrot.slane %v227_v7, %v239_v4  ;;  %v244_v19 = vrot.slane %v227_v7, %v243_v5  ;;  %v209_v41 = vld [vmem:[%s766_s7 + $0x70] sm:$0xff]  ;;  %v210_v42 = vld [vmem:[%s766_s7 + $0x78] sm:$0xff]  ;;  %s404_s27 = sshll.u32 (%p891_p8), %s645_s13, 2 }
  0x6e   : > { %v220_v40 = vmax.f32 %v204_v28, 0.0  ;;  %v221_v45 = vmax.f32 %v205_v29, 0.0  ;;  %v222_v46 = vmax.f32 %v206_v34, 0.0  ;;  %v223_v49 = vmax.f32 %v207_v35, 0.0  ;;  %s290_s28 = ssub.s32 (%p891_p8), 10, %s404_s27 }
  0x6f   : > { %v249_v23 = vmin.f32 %v211_v9, %v232_v10  ;;  %v250_v24 = vmin.f32 %v212_v11, %v236_v12  ;;  %v251_v30 = vmin.f32 %v213_v16, %v240_v17  ;;  %v252_v31 = vmin.f32 %v214_v18, %v244_v19  ;;  %p291_p9 = scmp.lt.s32.totalorder (%p891_p8), %s290_s28, 4 }
  0x70   : > { %v253_v37 = vmin.f32 %v215_v25, %v232_v10  ;;  %v254_v38 = vmin.f32 %v216_v26, %v236_v12  ;;  %v255_v43 = vmin.f32 %v217_v32, %v240_v17  ;;  %v256_v44 = vmin.f32 %v218_v33, %v244_v19 }
  0x71   : > { %265 = vst [vmem:[%s792_s20] sm:$0xff] %v249_v23  ;;  %266 = vst [vmem:[%s792_s20 + $0x8] sm:$0xff] %v250_v24  ;;  %v257_v47 = vmin.f32 %v219_v39, %v232_v10  ;;  %v258_v48 = vmin.f32 %v220_v40, %v236_v12  ;;  %v224_v50 = vmax.f32 %v208_v36, 0.0  ;;  %v259_v51 = vmin.f32 %v221_v45, %v240_v17 }
  0x72   : > { %267 = vst [vmem:[%s792_s20 + $0x10] sm:$0xff] %v251_v30  ;;  %268 = vst [vmem:[%s792_s20 + $0x18] sm:$0xff] %v252_v31  ;;  %v260_v52 = vmin.f32 %v222_v46, %v244_v19  ;;  %v225_v53 = vmax.f32 %v209_v41, 0.0  ;;  %v226_v54 = vmax.f32 %v210_v42, 0.0  ;;  %v261_v55 = vmin.f32 %v223_v49, %v232_v10  ;;  %288 = sbr.rel (!%p891_p8) target bundleno = 149 (0x95), region = 40 }
  0x73   : > { %269 = vst [vmem:[%s792_s20 + $0x20] sm:$0xff] %v253_v37  ;;  %270 = vst [vmem:[%s792_s20 + $0x28] sm:$0xff] %v254_v38  ;;  %v262_v56 = vmin.f32 %v224_v50, %v236_v12 }
  0x74   : > { %271 = vst [vmem:[%s792_s20 + $0x30] sm:$0xff] %v255_v43  ;;  %272 = vst [vmem:[%s792_s20 + $0x38] sm:$0xff] %v256_v44  ;;  %v263_v57 = vmin.f32 %v225_v53, %v240_v17  ;;  %v264_v58 = vmin.f32 %v226_v54, %v244_v19 }
  0x75   : > { %273 = vst [vmem:[%s792_s20 + $0x40] sm:$0xff] %v257_v47  ;;  %274 = vst [vmem:[%s792_s20 + $0x48] sm:$0xff] %v258_v48 }
  0x76   : > { %275 = vst [vmem:[%s792_s20 + $0x50] sm:$0xff] %v259_v51  ;;  %276 = vst [vmem:[%s792_s20 + $0x58] sm:$0xff] %v260_v52 }
  0x77   : > { %277 = vst [vmem:[%s792_s20 + $0x60] sm:$0xff] %v261_v55  ;;  %278 = vst [vmem:[%s792_s20 + $0x68] sm:$0xff] %v262_v56 }
  0x78   : > { %279 = vst [vmem:[%s792_s20 + $0x70] sm:$0xff] %v263_v57  ;;  %280 = vst [vmem:[%s792_s20 + $0x78] sm:$0xff] %v264_v58 }
  0x79   : > { %s900_s28 = smov (!%p291_p9, %s290_s28), 4 }
  0x7a   : > { %s816_s3 = sshll.u32 %s900_s28, 9 }
  0x7b   : > { %s296_s4 = ssub.s32 2048, %s816_s3 }
  0x7c   : > { %297 = vsyncadd %s282_s23, %s296_s4  ;;  %p407_p10 = scmp.ne.s32.totalorder %s816_s3, 0  ;;  %s419_s21 = sshll.u32 %s645_s13, 11 }
  0x7d   : > { %s826_s16 = scalar_lea.hbm %s876_s2, %s419_s21  ;;  %s303_s17 = sshll.u32 %s792_s20, 4  ;;  %s829_s17 = int_to_ptr.vmem [resolvable:$true] %s303_s17 }
  0x7e   : > { %s530_s24 = scalar_lea.vmem %s829_s17, %s816_s3  ;;  %s606_s26 = smov [#allocation7]  }
  0x7f   : > { %p531_p1 = scmp.ne.s32.totalorder %s829_s17, %s530_s24  ;;  %s534_s25 = sshll.u32 %s606_s26, 4  ;;  %s535_s25 = int_to_ptr.vmem [resolvable:$false] %s534_s25 }
  0x80   : > { %s536_s13 = scalar_lea.vmem %s535_s25, 4096  ;;  %p537_p4 = scmp.lt.s32.totalorder %s829_s17, %s535_s25 }
  0x81   : > { %p532_p0 = pnand %p531_p1, %p407_p10  ;;  %p538_p6 = scmp.lt.s32.totalorder %s536_s13, %s530_s24 }
  0x83   : > { %p533_p7 = pneg %p532_p0  ;;  %p539_p11 = por %p538_p6, %p537_p4 }
  0x85   : > { %p540_p13 = pnand %p539_p11, %p533_p7 }
  0x87   : > { %543 = shalt.err (!%p540_p13)
}
  0x88   : > { %s544_s19 = scalar_lea.hbm %s826_s16, %s816_s3  ;;  %s548_s6 = scalar_lea.hbm %s876_s2, 5120 }
  0x89   : > { %p545_p12 = scmp.ne.s32.totalorder %s826_s16, %s544_s19  ;;  %p549_p3 = scmp.lt.u32.totalorder %s826_s16, %s876_s2 }
  0x8a   : > { %p550_p8 = scmp.lt.u32.totalorder %s548_s6, %s544_s19  ;;  %p552_p1 = scmp.lt.u32.totalorder %s544_s19, %s826_s16 }
  0x8b   : > { %p546_p2 = pnand %p545_p12, %p407_p10 }
  0x8c   : > { %p551_p9 = por %p550_p8, %p549_p3 }
  0x8d   : > { %p547_p5 = pneg %p546_p2 }
  0x8e   : > { %p553_p0 = por %p552_p1, %p551_p9 }
  0x90   : > { %p554_p7 = pnand %p553_p0, %p547_p5 }
  0x92   : > { %557 = shalt.err (!%p554_p7)
}
  0x93   : > { %s607_s27 = smov 512   ;;  %s608_s28 = smov 32  }
  0x94   : > { %309 = dma.vmem_to_hbm [thread:$0]  (%p407_p10), %s829_s17, %s816_s3, %s826_s16, %s282_s23, %s607_s27, %s607_s27, %s608_s28  }
  0x95 PF: > { %p436_p4 = scmp.ge.s32.totalorder %s600_s12, 2  ;;  %s318_s4 = sand.u32 1, %s588_s9  }
  0x96   : > { %p892_p6 = scmp.ne.s32.totalorder %s883_s22, 0  ;;  %s319_s21 = scalar_lea.sflag [#allocation4], %s318_s4 }
  0x98   : > { %p431_p11 = pnand %p436_p4, %p892_p6 }
  0x9a   : > { %583 = dma.done.wait (!%p431_p11), %s319_s21, 2048  }
  0x9b   : > { %585 = vsyncadd (!%p431_p11), %s319_s21, 4294965248  ;;  %p16_p13 = scmp.ge.s32.totalorder %s649_s15, 5   ;;  %s893_s9 = smov %s592_s10 }
  0x9c   : > { %s894_s10 = smov %s596_s11  ;;  %s895_s11 = smov %s661_s18 }
  0x9d   : > { %s896_s12 = smov %s649_s15  ;;  %18 = sbr.rel (!%p16_p13) target bundleno = 6 (0x6), region = 77 }
  0xa4   :  { %324 = vsyncpa [#allocation3], 1 }
  0xa5   :  { %326 = vsyncpa [#allocation3 + $0x1], 1 }
  0xa6   :  { %327 = vsyncpa [#allocation6], 1 }
  0xa7   :  { %328 = vsyncpa [#allocation4], 1 }
  0xa8   :  { %330 = vsyncpa [#allocation4 + $0x1], 1 }

</bundles_post_ra>
